<compile_context>
chip_gen: v6e
topology: v6e:2x2x1
jax: 0.10.0
libtpu: 0.0.40
codegen_flags: <defaults>
</compile_context>

<pallas_src>
import jax
import jax.numpy as jnp
from jax.experimental import pallas as pl
from jax.experimental.pallas import tpu as pltpu


def _cdiv(a, b):
    return -(-a // b)


def _round_up(a, b):
    return _cdiv(a, b) * b


def _zmuv_kernel(x_ref, w_ref, b_ref, o_ref):
    # x_ref: [C, TILE]      input tile, flattened spatial on lanes
    # w_ref: [C_out, C]     1x1 conv weight with 1/std folded in
    # b_ref: [C_out, 1]     bias with -w @ (mean/std) folded in
    # o_ref: [C_out, TILE]
    o_ref[...] = (
        jnp.dot(w_ref[...], x_ref[...], preferred_element_type=jnp.float32)
        + b_ref[...]
    )


def _pick_tiling(HW, C, C_out, *, vmem_budget=12 * 2**20,
                 min_tile_lanes=512, target_tiles=8):
    """Pick (tile, n_tiles) along the flattened-spatial (lane) axis.

    - tile is a multiple of 128 (lane-dense output stores)
    - double-buffered in+out working set stays under `vmem_budget`
    - aims for >= target_tiles, even, grid steps (pipelining + v7x 2-TC split)
      while keeping tiles >= min_tile_lanes when the input is large enough
    """
    C_sub = _round_up(C, 8)
    C_out_sub = _round_up(C_out, 8)
    bytes_per_lane = 2 * (C_sub + C_out_sub) * 4     # double-buffered f32 in+out

    n_lanes = _cdiv(HW, 128)                         # number of 128-lane chunks
    cap_chunks = max(1, vmem_budget // (bytes_per_lane * 128))
    want_chunks = max(min_tile_lanes // 128, _cdiv(n_lanes, target_tiles))
    tile_chunks = max(1, min(n_lanes, cap_chunks, want_chunks))
    n_tiles = _cdiv(n_lanes, tile_chunks)
    if n_tiles > 1 and n_tiles % 2 == 1:             # even split across v7x TCs
        n_tiles += 1
    return tile_chunks * 128, n_tiles


def zero_mean_unit_var_forward(x, means, std, w, b):
    """x: [1, C, H, W] float32 (batch must be 1, mirroring squeeze/unsqueeze(0))."""
    assert x.ndim == 4 and x.shape[0] == 1, "module semantics require batch == 1"
    _, C, H, W = x.shape
    C_out = w.shape[0]
    HW = H * W

    # Fold normalization into the 1x1 conv (exact algebra, done once on [C]):
    #   (x - mean)/std  ->  w @ . + b   ==   (w * 1/std) @ x + (b - w @ (mean/std))
    means_f = means.astype(jnp.float32)
    std_f = std.astype(jnp.float32)
    w_f = w.astype(jnp.float32)
    b_f = b.astype(jnp.float32)
    inv_std = 1.0 / std_f
    w_fold = w_f * inv_std[None, :]                  # [C_out, C]
    b_fold = b_f - w_f @ (means_f * inv_std)         # [C_out]

    tile, n_tiles = _pick_tiling(HW, C, C_out)
    HW_pad = tile * n_tiles

    x2d = x.reshape(C, HW).astype(jnp.float32)
    if HW_pad != HW:
        # zero-pad the lane axis once; padded columns produce b' and are sliced off
        x2d = jnp.pad(x2d, ((0, 0), (0, HW_pad - HW)))
    b2d = b_fold.reshape(C_out, 1)

    # VMEM limit derived from the actual working set (layout-padded, f32).
    C_sub = _round_up(C, 8)
    C_out_sub = _round_up(C_out, 8)
    work_bytes = (2 * (C_sub + C_out_sub) * tile * 4          # dbl-buffered in+out
                  + C_out_sub * _round_up(C, 128) * 4          # weight block
                  + C_out_sub * 128 * 4)                       # bias block
    vmem_limit = int(min(48 * 2**20, max(16 * 2**20, work_bytes + 4 * 2**20)))

    cost = pl.CostEstimate(
        flops=2 * C * C_out * HW_pad,
        transcendentals=0,
        bytes_accessed=4 * ((C + C_out) * HW_pad + C_out * C + C_out),
    )

    out2d = pl.pallas_call(
        _zmuv_kernel,
        out_shape=jax.ShapeDtypeStruct((C_out, HW_pad), jnp.float32),
        grid=(n_tiles,),
        in_specs=[
            pl.BlockSpec((C, tile), lambda i: (0, i)),
            pl.BlockSpec((C_out, C), lambda i: (0, 0)),
            pl.BlockSpec((C_out, 1), lambda i: (0, 0)),
        ],
        out_specs=pl.BlockSpec((C_out, tile), lambda i: (0, i)),
        compiler_params=pltpu.CompilerParams(
            dimension_semantics=("parallel",),
            vmem_limit_bytes=vmem_limit),
        cost_estimate=cost,
    )(x2d, w_fold, b2d)

    out2d = out2d[:, :HW]
    return out2d.reshape(1, C_out, H, W)


def _reference(x, means, std, w, b):
    xn = (x[0] - means[:, None, None]) / std[:, None, None]
    return (jnp.einsum("oc,chw->ohw", w, xn) + b[:, None, None])[None]


if __name__ == "__main__":
    key = jax.random.PRNGKey(0)
    k_x, k_w, k_b, k_x2 = jax.random.split(key, 4)

    # Small shapes consistent with the module's forward (batch must be 1).
    C, H, W = 4, 16, 16
    C_out = 8

    means = jnp.array([0.485, 0.456, 0.406, 0.5], dtype=jnp.float32)
    std = jnp.array([0.229, 0.224, 0.225, 0.25], dtype=jnp.float32)

    # Deterministic synthetic parameters for the wrapped model (1x1 conv).
    w = 0.1 * jax.random.normal(k_w, (C_out, C), dtype=jnp.float32)
    b = 0.01 * jax.random.normal(k_b, (C_out,), dtype=jnp.float32)

    # Case 1: lane-aligned spatial size.
    x = jax.random.normal(k_x, (1, C, H, W), dtype=jnp.float32)
    out = jax.block_until_ready(zero_mean_unit_var_forward(x, means, std, w, b))
    ref = _reference(x, means, std, w, b)
    assert out.shape == (1, C_out, H, W)
    assert jnp.allclose(out, ref, atol=1e-5, rtol=1e-5)

    # Case 2: ragged spatial size (H*W not a multiple of 128) exercises padding.
    H2, W2 = 19, 19
    x2 = jax.random.normal(k_x2, (1, C, H2, W2), dtype=jnp.float32)
    out2 = jax.block_until_ready(zero_mean_unit_var_forward(x2, means, std, w, b))
    ref2 = _reference(x2, means, std, w, b)
    assert out2.shape == (1, C_out, H2, W2)
    assert jnp.allclose(out2, ref2, atol=1e-5, rtol=1e-5)

    print("KERNEL_OK")
</pallas_src>

<mosaic_0001>
module attributes {stable_mosaic.version = 11 : i64} {
  func.func @_zmuv_kernel(%arg0: i32, %arg1: memref<4x256xf32, #tpu.memory_space<vmem>>, %arg2: memref<8x4xf32, #tpu.memory_space<vmem>>, %arg3: memref<8x1xf32, #tpu.memory_space<vmem>>, %arg4: memref<8x256xf32, #tpu.memory_space<vmem>>) attributes {dimension_semantics = [#tpu.dimension_semantics<parallel>], iteration_bounds = array<i64: 1>, scalar_prefetch = 0 : i64, scratch_operands = 0 : i64, tpu.core_type = #tpu.core_type<tc>, window_params = [{transform_indices = @transform_0, window_bounds = array<i64: 4, 256>}, {pipeline_mode = #tpu.pipeline_mode<synchronous>, transform_indices = @transform_1, window_bounds = array<i64: 8, 4>}, {pipeline_mode = #tpu.pipeline_mode<synchronous>, transform_indices = @transform_2, window_bounds = array<i64: 8, 1>}, {transform_indices = @transform_3, window_bounds = array<i64: 8, 256>}]} {
    %c0 = arith.constant 0 : index
    %c0_0 = arith.constant 0 : index
    %0 = vector.load %arg2[%c0, %c0_0] : memref<8x4xf32, #tpu.memory_space<vmem>>, vector<8x4xf32>
    %c0_1 = arith.constant 0 : index
    %c0_2 = arith.constant 0 : index
    %1 = vector.load %arg1[%c0_1, %c0_2] : memref<4x256xf32, #tpu.memory_space<vmem>>, vector<4x256xf32>
    %cst = arith.constant dense<0.000000e+00> : vector<8x256xf32>
    %2 = tpu.matmul %0, %1, %cst {dimension_numbers = #tpu.dot_dimension_numbers<[1], [0], [0], [1], [0, 0, 1, 1], [], []>} : vector<8x4xf32>, vector<4x256xf32>, vector<8x256xf32> -> vector<8x256xf32>
    %c0_3 = arith.constant 0 : index
    %c0_4 = arith.constant 0 : index
    %3 = vector.load %arg3[%c0_3, %c0_4] : memref<8x1xf32, #tpu.memory_space<vmem>>, vector<8x1xf32>
    %4 = vector.broadcast %3 : vector<8x1xf32> to vector<8x256xf32>
    %5 = arith.addf %2, %4 : vector<8x256xf32>
    %c0_5 = arith.constant 0 : index
    %c0_6 = arith.constant 0 : index
    %6 = vector.load %arg4[%c0_5, %c0_6] : memref<8x256xf32, #tpu.memory_space<vmem>>, vector<8x256xf32>
    tpu.vector_store %arg4[%c0_5, %c0_6], %5 {strides = array<i32>} : memref<8x256xf32, #tpu.memory_space<vmem>>, vector<8x256xf32>,
    return
  }
  func.func @transform_0(%arg0: i32) -> (i32, i32) {
    %c0_i32 = arith.constant 0 : i32
    %c0_i32_0 = arith.constant 0 : i32
    return %c0_i32, %arg0 : i32, i32
  }
  func.func @transform_1(%arg0: i32) -> (i32, i32) {
    %c0_i32 = arith.constant 0 : i32
    %c0_i32_0 = arith.constant 0 : i32
    %c0_i32_1 = arith.constant 0 : i32
    return %c0_i32, %c0_i32_0 : i32, i32
  }
  func.func @transform_2(%arg0: i32) -> (i32, i32) {
    %c0_i32 = arith.constant 0 : i32
    %c0_i32_0 = arith.constant 0 : i32
    %c0_i32_1 = arith.constant 0 : i32
    return %c0_i32, %c0_i32_0 : i32, i32
  }
  func.func @transform_3(%arg0: i32) -> (i32, i32) {
    %c0_i32 = arith.constant 0 : i32
    %c0_i32_0 = arith.constant 0 : i32
    return %c0_i32, %arg0 : i32, i32
  }
}

</mosaic_0001>

<bundles_post_ra>
// kernel: tpu_custom_call.1
= control target key start
LH: loop header
LB: loop body
LE: loop exit
PB: predicated region body
PF: predicated region fallthrough
CT: control target
= control target key end

     0   :  { %vm29_vm0 = vcmask 1043456   ;;  %v151_v2 = vmov 0.0   ;;  %v152_v3 = vmov 0   ;;  %s186_s0 = inlined_call_operand.vmem [shape: f32[4,256], index: 0, kind: input, shape index: {}]   ;;  %s187_s1 = inlined_call_operand.vmem [shape: f32[8,4], index: 1, kind: input, shape index: {}]   ;;  %s188_s2 = inlined_call_operand.vmem [shape: f32[8,1], index: 2, kind: input, shape index: {}]   ;;  %s189_s3 = inlined_call_operand.hbm [shape: f32[8,256], index: 3, kind: output, shape index: {}]  }
   0x1   :  { %v16_v0 = vld [vmem:[%s186_s0] sm:$0xff]  ;;  %98 = vmatprep.mubr.f32.mxu0 %v151_v2  ;;  %127 = vset.pattern.permute.xlu0 %v152_v3 }
   0x2   :  { %v24_v1 = vcombine.high %v16_v0, %v16_v0  ;;  %v17_v4 = vld [vmem:[%s188_s2] sm:$0xff] }
   0x3   :  { %8 = vsyncpa [#allocation3], 0  ;;  %v15_v5 = vld [vmem:[%s187_s1] sm:$0xff]  ;;  %vm25_vm1 = vcmask 31744   ;;  %20 = vperm.xlu0 %127, %v17_v4   ;;  %s153_s0 = smov [#allocation2]  }
   0x4   :  { %121 = vmatprep.subr.msk.mxu0 %vm29_vm0, %v24_v1  ;;  %s113_s18 = sshll.u32 %s153_s0, 4  ;;  %s114_s18 = int_to_ptr.vmem [resolvable:$true] %s113_s18 }
   0x5   :  { %122 = vmatpush1.msk.msra.mxu0 %vm29_vm0, %v16_v0  ;;  %s129_s2 = scalar_lea.vmem %s114_s18, 256  ;;  %p134_p1 = scmp.lt.s32.totalorder %s114_s18, %s114_s18 }
   0x6   :  { %123 = vmatmul.mubr.msk.f32.vlgmr.msra.gmra.mxu0 %vm25_vm1, %v15_v5  ;;  %p130_p0 = scmp.ne.s32.totalorder %s114_s18, %s129_s2  ;;  %p135_p2 = scmp.lt.s32.totalorder %s129_s2, %s129_s2 }
   0x8   :  { %p136_p3 = por %p135_p2, %p134_p1 }
   0xa   :  { %p137_p4 = pnand %p136_p3, %p130_p0 }
  0x7e   :  { %v21_v6 = vpop.permute.xlu0 %20 }
  0xc6   :  { %v100_v7 = vpop.f32.mrf.mxu0 }
  0xc7   :  { %v101_v8 = vadd.f32 %v100_v7, %v21_v6 }
  0xc8   :  { %v102_v9 = vpop.f32.mrf.mxu0 }
  0xc9   :  { %105 = vst [vmem:[#allocation2] sm:$0xff] %v101_v8  ;;  %v103_v10 = vadd.f32 %v102_v9, %v21_v6 }
  0xcb   :  { %106 = vst [vmem:[#allocation2 + $0x8] sm:$0xff] %v103_v10 }
  0xcc   :  { %140 = shalt.err (!%p137_p4)
}
  0xcd   :  { %116 = dma.vmem_to_hbm [thread:$0]  %s114_s18, 256, %s189_s3, [#allocation3]  }
  0xce   :  { %149 = dma.done.wait [#allocation3], 256  }
  0xcf   :  { %150 = vsyncadd [#allocation3], 4294967040 }
  0xd0   :  { %120 = vsyncpa [#allocation3], 1 }

</bundles_post_ra>
